<compile_context>
chip_gen: v7x
topology: tpu7x:2x2x1
jax: 0.10.0
libtpu: 0.0.40
codegen_flags: <defaults>
</compile_context>

<pallas_src>
import jax
import jax.numpy as jnp
from jax.experimental import pallas as pl
from jax.experimental.pallas import tpu as pltpu

EPS = 1e-5  # PyTorch BatchNorm1d default eps


def _gate_kernel(t12_ref, v_ref, o_ref):
    """Elementwise gating tile.
       t12_ref: (tR, 2) f32 -- column 0 = t1, column 1 = t2 (per batch*channel row)
       v_ref, o_ref: (tR, tN) feature-map tile (f32 or bf16)
    """
    t1 = t12_ref[:, 0:1]                       # (tR, 1) f32
    t2 = t12_ref[:, 1:2]                       # (tR, 1) f32
    v = v_ref[...].astype(jnp.float32)         # upcast (no-op for f32 I/O)
    gated = jax.nn.sigmoid(jnp.tanh(v * t1) + t2)
    o_ref[...] = gated.astype(o_ref.dtype)


def metablock_forward(v_nchw, u, w_stack, bias, gamma, beta, run_mean, run_var):
    """MetaBlock forward (eval-mode BatchNorm semantics).

    v_nchw:  (B, C, H, W) feature maps (float32 or bfloat16 -> same dtype out)
    u:       (B, Umeta)   metadata
    w_stack: (2, Umeta, C) stacked [fb, gb] linear weights (transposed)
    bias, gamma, beta, run_mean, run_var: (2, C) per-branch params
    """
    B, C, H, W = v_nchw.shape
    N = H * W
    R = B * C

    io_dtype = jnp.dtype(v_nchw.dtype)
    if io_dtype not in (jnp.dtype(jnp.float32), jnp.dtype(jnp.bfloat16)):
        v_nchw = v_nchw.astype(jnp.float32)
        io_dtype = jnp.dtype(jnp.float32)
    elt = io_dtype.itemsize

    # ---- Fold BatchNorm1d (eval) into the Linear; compute t1/t2 once, always in f32 ----
    # Eval-mode (running statistics) only; training-mode batch stats are not supported.
    f32 = jnp.float32
    scale = gamma.astype(f32) / jnp.sqrt(run_var.astype(f32) + EPS)        # (2, C)
    w_f = w_stack.astype(f32) * scale[:, None, :]                          # (2, U, C)
    b_f = (bias.astype(f32) - run_mean.astype(f32)) * scale + beta.astype(f32)
    t = jnp.einsum("bu,kuc->kbc", u.astype(f32), w_f,
                   preferred_element_type=f32) + b_f[:, None, :]           # (2, B, C)
    t12 = jnp.stack([t[0].reshape(R), t[1].reshape(R)], axis=-1)           # (R, 2) f32

    # ---- Dense 2D slab layout: rows = B*C (sublanes), lanes = H*W ----
    v2 = v_nchw.reshape(R, N)

    # ---- Tile selection (~4 MiB per V/out block; fits all of v5e/v6e/v7x) ----
    BLOCK_BYTES = 4 << 20

    if N >= 128:
        # Lane tile: multiple of 128 -> unmasked vst on the bulk of the blocks.
        tN = min(max(128, (N // 128) * 128), 2048)
    else:
        tN = N  # TODO(synk): tiny feature maps (<128 lanes) fall back to masked stores.

    if R <= 8:
        tR = R                                   # equals the full row extent
    else:
        rows_budget = max(8, (BLOCK_BYTES // (tN * elt)) // 8 * 8)
        tR = min(max(8, (R // 8) * 8), rows_budget, 1024)

    # Megacore (v7x has 2 TensorCores): make sure the "parallel" grid has >= 2 blocks.
    if pl.cdiv(R, tR) * pl.cdiv(N, tN) < 2:
        if tN > 128:
            tN = max(128, (tN // 2 // 128) * 128)
        elif tR > 8:
            tR = max(8, (tR // 2 // 8) * 8)

    # Lane axis (j) is the INNERMOST grid dim: t12's block index is constant across it,
    # so the tiny t12 tile is not re-fetched per inner step. Do not swap this order.
    grid = (pl.cdiv(R, tR), pl.cdiv(N, tN))

    block_bytes = tR * tN * elt
    # in + out, double-buffered, plus headroom for the (tR,2) sidecar and scratch.
    vmem_limit = int(min(32 << 20, max(16 << 20, 4 * block_bytes + (4 << 20))))

    cost = pl.CostEstimate(
        flops=3 * R * N,                      # mul + add + compare-ish per element
        transcendentals=2 * R * N,            # tanh + sigmoid
        bytes_accessed=2 * R * N * elt + R * 2 * 4,
    )

    out = pl.pallas_call(
        _gate_kernel,
        out_shape=jax.ShapeDtypeStruct((R, N), io_dtype),
        grid_spec=pltpu.PrefetchScalarGridSpec(
            num_scalar_prefetch=0,
            grid=grid,
            in_specs=[
                pl.BlockSpec((tR, 2), lambda i, j: (i, 0)),    # [t1|t2] per row-tile
                pl.BlockSpec((tR, tN), lambda i, j: (i, j)),   # V tile (lane-dense)
            ],
            out_specs=pl.BlockSpec((tR, tN), lambda i, j: (i, j)),
        ),
        compiler_params=pltpu.CompilerParams(
            dimension_semantics=("parallel", "parallel"),
            vmem_limit_bytes=vmem_limit),
        cost_estimate=cost,
    )(t12, v2)

    return out.reshape(B, C, H, W)


def metablock_reference(v_nchw, u, w_stack, bias, gamma, beta, run_mean, run_var):
    """Pure-JAX reference (same math as the PyTorch module in eval mode)."""
    B, C, H, W = v_nchw.shape
    v3 = v_nchw.reshape(B, C, H * W)

    def branch(i):
        x = u @ w_stack[i] + bias[i]
        return (x - run_mean[i]) / jnp.sqrt(run_var[i] + EPS) * gamma[i] + beta[i]

    t1 = branch(0)
    t2 = branch(1)
    out = jax.nn.sigmoid(jnp.tanh(v3 * t1[:, :, None]) + t2[:, :, None])
    return out.reshape(B, C, H, W)


if __name__ == "__main__":
    # Small shapes consistent with the module: V feature maps = 4, metadata dim U = 8.
    B, C, H, W = 2, 4, 16, 16
    Umeta = 8

    key = jax.random.PRNGKey(0)
    k_v, k_u, k_w, k_b, k_g, k_be, k_m, k_var = jax.random.split(key, 8)

    v_in = jax.random.normal(k_v, (B, C, H, W), dtype=jnp.float32)
    u_in = jax.random.normal(k_u, (B, Umeta), dtype=jnp.float32)

    # Deterministic parameter init (synthetic; no checkpoint).
    init_scale = 1.0 / jnp.sqrt(jnp.float32(Umeta))
    w_stack = jax.random.uniform(k_w, (2, Umeta, C), jnp.float32, -init_scale, init_scale)
    bias    = jax.random.uniform(k_b,  (2, C), jnp.float32, -init_scale, init_scale)
    gamma   = jax.random.uniform(k_g,  (2, C), jnp.float32, 0.5, 1.5)
    beta    = jax.random.uniform(k_be, (2, C), jnp.float32, -0.1, 0.1)
    r_mean  = jax.random.uniform(k_m,  (2, C), jnp.float32, -0.5, 0.5)
    r_var   = jax.random.uniform(k_var, (2, C), jnp.float32, 0.5, 1.5)

    ref = jax.block_until_ready(
        metablock_reference(v_in, u_in, w_stack, bias, gamma, beta, r_mean, r_var))

    # f32 I/O path (matches the PyTorch eval-mode module numerics).
    out = jax.block_until_ready(
        metablock_forward(v_in, u_in, w_stack, bias, gamma, beta, r_mean, r_var))
    assert out.shape == (B, C, H, W)
    assert out.dtype == jnp.float32
    assert jnp.allclose(out, ref, rtol=1e-5, atol=1e-5), "f32 Pallas output mismatch"

    # bf16 I/O path (halved HBM traffic; math still f32 inside the kernel).
    out_bf = jax.block_until_ready(
        metablock_forward(v_in.astype(jnp.bfloat16), u_in, w_stack, bias, gamma,
                          beta, r_mean, r_var))
    assert out_bf.shape == (B, C, H, W)
    assert out_bf.dtype == jnp.bfloat16
    assert jnp.allclose(out_bf.astype(jnp.float32), ref, atol=3e-2), \
        "bf16 Pallas output mismatch"

    print("KERNEL_OK")
</pallas_src>

<mosaic_0001>
module attributes {stable_mosaic.version = 11 : i64} {
  func.func @_gate_kernel(%arg0: i32, %arg1: i32, %arg2: memref<8x2xf32, #tpu.memory_space<vmem>>, %arg3: memref<8x128xf32, #tpu.memory_space<vmem>>, %arg4: memref<8x128xf32, #tpu.memory_space<vmem>>) attributes {dimension_semantics = [#tpu.dimension_semantics<parallel>, #tpu.dimension_semantics<parallel>], iteration_bounds = array<i64: 1, 2>, scalar_prefetch = 0 : i64, scratch_operands = 0 : i64, tpu.core_type = #tpu.core_type<tc>, window_params = [{transform_indices = @transform_0, window_bounds = array<i64: 8, 2>}, {transform_indices = @transform_1, window_bounds = array<i64: 8, 128>}, {transform_indices = @transform_2, window_bounds = array<i64: 8, 128>}]} {
    %c0 = arith.constant 0 : index
    %c0_0 = arith.constant 0 : index
    %0 = vector.load %arg2[%c0, %c0_0] : memref<8x2xf32, #tpu.memory_space<vmem>>, vector<8x1xf32>
    %c0_1 = arith.constant 0 : index
    %c1 = arith.constant 1 : index
    %1 = vector.load %arg2[%c0_1, %c1] : memref<8x2xf32, #tpu.memory_space<vmem>>, vector<8x1xf32>
    %c0_2 = arith.constant 0 : index
    %c0_3 = arith.constant 0 : index
    %2 = vector.load %arg3[%c0_2, %c0_3] : memref<8x128xf32, #tpu.memory_space<vmem>>, vector<8x128xf32>
    %3 = vector.broadcast %0 : vector<8x1xf32> to vector<8x128xf32>
    %4 = arith.mulf %2, %3 : vector<8x128xf32>
    %5 = math.tanh %4 : vector<8x128xf32>
    %6 = vector.broadcast %1 : vector<8x1xf32> to vector<8x128xf32>
    %7 = arith.addf %5, %6 : vector<8x128xf32>
    %8 = arith.negf %7 : vector<8x128xf32>
    %9 = math.exp %8 : vector<8x128xf32>
    %cst = arith.constant 1.000000e+00 : f32
    %10 = vector.broadcast %cst : f32 to vector<8x128xf32>
    %11 = arith.addf %10, %9 : vector<8x128xf32>
    %12 = arith.divf %10, %11 : vector<8x128xf32>
    %c0_4 = arith.constant 0 : index
    %c0_5 = arith.constant 0 : index
    %13 = vector.load %arg4[%c0_4, %c0_5] : memref<8x128xf32, #tpu.memory_space<vmem>>, vector<8x128xf32>
    tpu.vector_store %arg4[%c0_4, %c0_5], %12 {strides = array<i32>} : memref<8x128xf32, #tpu.memory_space<vmem>>, vector<8x128xf32>,
    return
  }
  func.func @transform_0(%arg0: i32, %arg1: i32) -> (i32, i32) {
    %c0_i32 = arith.constant 0 : i32
    %c0_i32_0 = arith.constant 0 : i32
    return %arg0, %c0_i32 : i32, i32
  }
  func.func @transform_1(%arg0: i32, %arg1: i32) -> (i32, i32) {
    %c0_i32 = arith.constant 0 : i32
    return %arg0, %arg1 : i32, i32
  }
  func.func @transform_2(%arg0: i32, %arg1: i32) -> (i32, i32) {
    %c0_i32 = arith.constant 0 : i32
    return %arg0, %arg1 : i32, i32
  }
}

</mosaic_0001>

<bundles_post_ra>
// kernel: tpu_custom_call.1
= control target key start
LH: loop header
LB: loop body
LE: loop exit
PB: predicated region body
PF: predicated region fallthrough
CT: control target
= control target key end

     0   :  { %7 = vsyncpa [#allocation3], 0  ;;  %s723_s0 = inlined_call_operand.vmem [shape: f32[8,2], index: 0, kind: input, shape index: {}]   ;;  %s724_s1 = inlined_call_operand.hbm [shape: f32[8,256], index: 1, kind: input, shape index: {}]   ;;  %s725_s2 = inlined_call_operand.hbm [shape: f32[8,256], index: 2, kind: output, shape index: {}]  }
   0x1   :  { %9 = vsyncpa [#allocation3 + $0x1], 0 }
   0x2   :  { %10 = vsyncpa [#allocation4], 0 }
   0x3   :  { %12 = vsyncpa [#allocation4 + $0x1], 0  ;;  %s548_s9 = smov 0   ;;  %s550_s10 = smov 0  }
   0x4   :  { %s552_s11 = smov 0   ;;  %s554_s12 = smov 0  }
   0x5   :  { %s556_s13 = smov 0   ;;  %s558_s14 = smov 0  }
   0x6 LB: > { %s328_s15 = sadd.s32 4294967295, %s527_s14   ;;  %s329_s16 = sadd.s32 4294967294, %s527_s14   ;;  %s527_s14 = sphi %s558_s14, %s18_s14   ;;  %s523_s13 = sphi %s556_s13, %s741_s13   ;;  %s519_s12 = sphi %s554_s12, %s740_s12   ;;  %s515_s11 = sphi %s552_s11, %s739_s11   ;;  %s511_s10 = sphi %s550_s10, %s738_s10   ;;  %s507_s9 = sphi %s548_s9, %s737_s9  }
   0x7   : > { %s27_s17 = sadd.s32 1, %s523_s13  ;;  %s65_s18 = sadd.s32 1, %s515_s11 }
   0x8   : > { %p28_p0 = scmp.ge.s32.totalorder %s27_s17, 2  ;;  %p72_p1 = scmp.ne.s32.totalorder %s515_s11, %s511_s10 }
   0x9   : > { %p73_p2 = scmp.eq.s32.totalorder %s527_s14, 0  ;;  %p78_p3 = scmp.ne.s32.totalorder %s511_s10, %s507_s9 }
   0xa   : > { %s743_s17 = smov (%p28_p0, %s27_s17), 0  ;;  %p79_p5 = scmp.eq.s32.totalorder %s328_s15, 0 }
   0xb   : > { %p589_p4 = por %p73_p2, %p72_p1  ;;  %s61_s20 = ssub.s32 %s523_s13, %s743_s17 }
   0xc   : > { %p104_p6 = scmp.eq.s32.totalorder %s328_s15, 1  ;;  %p63_p7 = scmp.eq.s32.totalorder %s61_s20, 0 }
   0xd   : > { %p595_p8 = por %p79_p5, %p78_p3  ;;  %p110_p10 = scmp.eq.s32.totalorder %s329_s16, 1 }
   0xe   : > { %p599_p9 = por %p104_p6, %p72_p1  ;;  %p355_p13 = scmp.lt.s32.totalorder %s527_s14, 2 }
   0xf   : > { %s604_s23 = scalar_select %p63_p7, %s515_s11, %s65_s18  }
  0x10   : > { %s729_s22 = scalar_select %p599_p9, 1, 0 }
  0x11   : > { %p606_p11 = por %p110_p10, %p78_p3  ;;  %s137_s25 = sand.u32 1, %s515_s11  }
  0x12   : > { %s333_s26 = sshll.u32 %s137_s25, 3  ;;  %s334_s27 = sshll.u32 %s523_s13, 7 }
  0x13   : > { %s730_s24 = scalar_select %p606_p11, 1, 0 }
  0x14   : > { %s617_s30 = scalar_lea.hbm %s724_s1, %s334_s27  ;;  %s141_s3 = scalar_lea.vmem [#allocation2], %s333_s26 }
  0x15   : > { %s150_s4 = sshll.u32 %s141_s3, 4  ;;  %p623_p0 = pnand %p355_p13, %p589_p4  ;;  %s619_s4 = int_to_ptr.vmem [resolvable:$true] %s150_s4 }
  0x16   : > { %s138_s6 = scalar_lea.sflag [#allocation3], %s137_s25  ;;  %s415_s7 = scalar_lea.hbm %s617_s30, 128 }
  0x17   : > { %p416_p3 = scmp.ne.s32.totalorder %s617_s30, %s415_s7  ;;  %p417_p5 = pneg %p623_p0 }
  0x18   : > { %s420_s16 = scalar_lea.hbm %s724_s1, 256  ;;  %p421_p4 = scmp.lt.u32.totalorder %s617_s30, %s724_s1 }
  0x19   : > { %p418_p6 = pnand %p417_p5, %p416_p3  ;;  %p422_p10 = scmp.lt.u32.totalorder %s420_s16, %s415_s7 }
  0x1a   : > { %p424_p12 = scmp.lt.u32.totalorder %s415_s7, %s617_s30 }
  0x1b   : > { %p419_p7 = pneg %p418_p6  ;;  %p423_p13 = por %p422_p10, %p421_p4 }
  0x1d   : > { %p425_p1 = por %p424_p12, %p423_p13 }
  0x1f   : > { %p426_p2 = pnand %p425_p1, %p419_p7 }
  0x21   : > { %429 = shalt.err (!%p426_p2)
}
  0x22   : > { %s430_s20 = scalar_lea.vmem %s619_s4, 128  ;;  %s529_s25 = smov [#allocation2]  }
  0x23   : > { %p431_p3 = scmp.ne.s32.totalorder %s619_s4, %s430_s20  ;;  %s435_s26 = sshll.u32 %s529_s25, 4  ;;  %s436_s26 = int_to_ptr.vmem [resolvable:$false] %s435_s26 }
  0x24   : > { %s437_s27 = scalar_lea.vmem %s436_s26, 256  ;;  %p438_p9 = scmp.lt.s32.totalorder %s619_s4, %s436_s26 }
  0x25   : > { %p433_p6 = pnand %p431_p3, %p417_p5  ;;  %p439_p4 = scmp.lt.s32.totalorder %s437_s27, %s430_s20 }
  0x27   : > { %p434_p11 = pneg %p433_p6  ;;  %p440_p10 = por %p439_p4, %p438_p9 }
  0x29   : > { %p441_p12 = pnand %p440_p10, %p434_p11 }
  0x2b   : > { %444 = shalt.err (!%p441_p12)
}
  0x2c   : > { %350 = dma.hbm_to_vmem [thread:$0]  (!%p623_p0), %s617_s30, 128, %s619_s4, %s138_s6  }
  0x2d   : > { %p732_p1 = scmp.lt.s32.totalorder %s527_s14, 3  ;;  %p733_p2 = scmp.ge.s32.totalorder %s527_s14, 1 }
  0x2f   : > { %p156_p5 = pnand %p733_p2, %p732_p1 }
  0x30   : > { %s659_s28 = sand.u32 (!%p156_p5), 1, %s511_s10  }
  0x31   : > { %159 = sbr.rel (%p156_p5) target bundleno = 242 (0xf2), region = 28  ;;  %s336_s29 = sshll.u32 (!%p156_p5), %s659_s28, 3 }
  0x32   : > { %s162_s3 = scalar_lea.sflag (!%p156_p5), [#allocation3], %s659_s28  ;;  %s165_s7 = scalar_lea.vmem (!%p156_p5), [#allocation2], %s336_s29 }
  0x38   : > { %498 = dma.done.wait (%p595_p8), %s162_s3, 128  }
  0x39   : > { %500 = vsyncadd (%p595_p8), %s162_s3, 4294967168  ;;  %v530_v0 = vmov 0   ;;  %v194_v1 = vld [vmem:[%s723_s0] sm:$0xff]  ;;  %v531_v2 = vmov 1   ;;  %s340_s21 = sshll.u32 %s519_s12, 7  ;;  %s189_s5 = scalar_lea.vmem [#allocation5], %s336_s29 }
  0x3a   : > { %407 = vset.pattern.permute.xlu0 %v530_v0  ;;  %v195_v3 = vld [vmem:[%s165_s7] sm:$0xff]  ;;  %s231_s6 = sshll.u32 %s189_s5, 4  ;;  %s674_s16 = scalar_lea.hbm %s725_s2, %s340_s21  ;;  %s676_s6 = int_to_ptr.vmem [resolvable:$true] %s231_s6 }
  0x3b   : > { %198 = vperm.xlu0 %407, %v194_v1   ;;  %s216_s18 = scalar_lea.sflag [#allocation4], %s659_s28  ;;  %s445_s19 = scalar_lea.vmem %s676_s6, 128 }
  0x3c   : > { %p446_p8 = scmp.ne.s32.totalorder %s676_s6, %s445_s19  ;;  %p734_p9 = scmp.ne.s32.totalorder %s729_s22, 0 }
  0x3d   : > { %s532_s12 = smov [#allocation5]  }
  0x3e   : > { %p447_p11 = pnand %p446_p8, %p734_p9  ;;  %s449_s20 = sshll.u32 %s532_s12, 4  ;;  %s450_s20 = int_to_ptr.vmem [resolvable:$false] %s449_s20 }
  0x3f   : > { %408 = vset.pattern.permute.xlu0 %v531_v2  ;;  %s451_s25 = scalar_lea.vmem %s450_s20, 256  ;;  %p452_p7 = scmp.lt.s32.totalorder %s676_s6, %s450_s20 }
  0x40   : > { %204 = vperm.xlu0 %408, %v194_v1   ;;  %p448_p0 = pneg %p447_p11  ;;  %p453_p13 = scmp.lt.s32.totalorder %s451_s25, %s445_s19 }
  0x42   : > { %p454_p3 = por %p453_p13, %p452_p7 }
  0x44   : > { %p455_p6 = pnand %p454_p3, %p448_p0 }
  0xba   : > { %v199_v4 = vpop.permute.xlu0 %198 }
  0xbb   : > { %v201_v5 = vmul.f32 %v199_v4, %v195_v3 }
  0xbd   : > { %409 = vtanh.f32 %v201_v5 }
  0xbf   : > { %v205_v6 = vpop.permute.xlu0 %204 }
  0xc7   : > { %v410_v7 = vpop.eup %409 }
  0xc8   : > { %v207_v8 = vadd.f32 %v410_v7, %v205_v6 }
  0xca   : > { %v338_v9 = vmul.f32 -1.442695, %v207_v8 }
  0xcc   : > { %411 = vpow2.f32 %v338_v9 }
  0xd6   : > { %v412_v10 = vpop.eup %411 }
  0xd7   : > { %v211_v11 = vadd.f32 1.0, %v412_v10 }
  0xd9   : > { %413 = vrcp.f32 %v211_v11 }
  0xe3   : > { %v414_v12 = vpop.eup %413 }
  0xe4   : > { %214 = vst [vmem:[%s189_s5] sm:$0xff] %v414_v12 }
  0xe5   : > { %458 = shalt.err (!%p455_p6)
}
  0xe6   : > { %s459_s26 = scalar_lea.hbm %s674_s16, 128  ;;  %s463_s29 = scalar_lea.hbm %s725_s2, 256 }
  0xe7   : > { %p460_p4 = scmp.ne.s32.totalorder %s674_s16, %s459_s26  ;;  %p464_p1 = scmp.lt.u32.totalorder %s674_s16, %s725_s2 }
  0xe8   : > { %p465_p2 = scmp.lt.u32.totalorder %s463_s29, %s459_s26  ;;  %p467_p8 = scmp.lt.u32.totalorder %s459_s26, %s674_s16 }
  0xe9   : > { %p461_p10 = pnand %p460_p4, %p734_p9 }
  0xea   : > { %p466_p5 = por %p465_p2, %p464_p1 }
  0xeb   : > { %p462_p12 = pneg %p461_p10 }
  0xec   : > { %p468_p11 = por %p467_p8, %p466_p5 }
  0xee   : > { %p469_p0 = pnand %p468_p11, %p462_p12 }
  0xf0   : > { %472 = shalt.err (!%p469_p0)
}
  0xf1   : > { %345 = dma.vmem_to_hbm [thread:$0]  (%p734_p9), %s676_s6, 128, %s674_s16, %s216_s18  }
  0xf2 PF: > { %s243_s30 = sand.u32 1, %s507_s9   ;;  %p735_p7 = scmp.ne.s32.totalorder %s730_s24, 0 }
  0xf3   : > { %p736_p13 = scmp.ge.s32.totalorder %s527_s14, 2  ;;  %s244_s4 = scalar_lea.sflag [#allocation4], %s243_s30 }
  0xf5   : > { %p352_p3 = pnand %p736_p13, %p735_p7 }
  0xf7   : > { %502 = dma.done.wait (!%p352_p3), %s244_s4, 128  }
  0xf8   : > { %504 = vsyncadd (!%p352_p3), %s244_s4, 4294967168  ;;  %s18_s14 = sadd.s32 1, %s527_s14   ;;  %s737_s9 = smov %s511_s10 }
  0xf9   : > { %p15_p6 = scmp.ge.s32.totalorder %s18_s14, 4   ;;  %s738_s10 = smov %s515_s11 }
  0xfa   : > { %s739_s11 = smov %s604_s23  ;;  %s740_s12 = smov %s523_s13 }
  0xfb   : > { %s741_s13 = smov %s743_s17  ;;  %17 = sbr.rel (!%p15_p6) target bundleno = 6 (0x6), region = 76 }
 0x102   :  { %249 = vsyncpa [#allocation3], 1 }
 0x103   :  { %251 = vsyncpa [#allocation3 + $0x1], 1 }
 0x104   :  { %252 = vsyncpa [#allocation4], 1 }
 0x105   :  { %254 = vsyncpa [#allocation4 + $0x1], 1 }

</bundles_post_ra>
